<compile_context>
chip_gen: v5e
topology: v5e:2x2
jax: 0.10.0
libtpu: 0.0.40
codegen_flags: <defaults>
</compile_context>

<pallas_src>
import jax
import jax.numpy as jnp
from jax import lax
from jax.experimental import pallas as pl
from jax.experimental.pallas import tpu as pltpu

_EPS = 1e-12


def _round_up(a, m):
    return ((a + m - 1) // m) * m


def _vmem_capacity_bytes():
    """Physical VMEM per TensorCore; conservative 64 MiB (v7x) fallback."""
    try:
        info = pltpu.get_tpu_info()
        for attr in ("vmem_capacity_bytes", "vmem_bytes", "vmem_size_bytes"):
            v = getattr(info, attr, None)
            if v:
                return int(v)
    except Exception:
        pass
    return 64 << 20


def _pick_row_tile(c, budget_bytes):
    """Largest power-of-two row tile whose working set fits `budget_bytes`.

    Accounting (f32 unless noted), with cp = lane-padded feature width:
      x, y inputs, double-buffered : 2 * 2 * tb * cp * 4
      out, double-buffered         :     2 * tb * cp * 4
      in-kernel temporaries        :    ~3 * tb * cp * 4   (dot result, xb, bf16 y)
      resident weight (bf16) + bias:  counted at 2x to stay safe if the
                                      single-buffer request is not honored.
    """
    cp = _round_up(c, 128)
    resident = 2 * (cp * cp * 2 + cp * 4)
    tb = 1024
    while tb > 8 and (9 * tb * cp * 4 + resident) > budget_bytes:
        tb //= 2
    return max(tb, 8)


def affine_kernel(r_ref, x_ref, y_ref, w_ref, b_ref, o_ref):
    """One batch tile.

    r_ref : (1, 1)   f32 in SMEM   (runtime scale r)
    x_ref : (TB, C)  f32 in VMEM
    y_ref : (TB, C)  f32 in VMEM
    w_ref : (C, C)   bf16 in VMEM  (pre-transposed: [in, out], grid-invariant)
    b_ref : (1, C)   f32 in VMEM   (grid-invariant)
    o_ref : (TB, C)  f32 in VMEM
    """
    r = r_ref[0, 0]

    # bias = y @ W^T + b  (W was transposed once in the wrapper, so this is a
    # straight (TB,C)x(C,C) MXU matmul; bf16 operands, f32 accumulation).
    bias = jnp.dot(
        y_ref[...].astype(w_ref.dtype), w_ref[...],
        preferred_element_type=jnp.float32,
    ) + b_ref[...]

    xb = x_ref[...].astype(jnp.float32) + r * bias            # (TB, C)

    # F.normalize(x, dim=1): x / max(||x||_2, eps)
    #   = x * rsqrt(max(sum(x^2), eps^2))   (EUP rsqrt instead of VALU divide)
    sq = jnp.sum(xb * xb, axis=1, keepdims=True)               # lane reduction
    inv = lax.rsqrt(jnp.maximum(sq, _EPS * _EPS))
    o_ref[...] = (xb * inv).astype(o_ref.dtype)


def affine_forward(x, y, w_beta, b_beta, r=1.0, *, dot_dtype=jnp.bfloat16):
    """x: [B, C], y: [B, C], w_beta: [C_out, C_in] (PyTorch Linear layout),
    b_beta: [C_out]. Returns normalize(x + r * (y @ w_beta.T + b_beta), dim=1)."""
    B, C = x.shape
    assert y.shape == (B, C)
    assert w_beta.shape == (C, C) and b_beta.shape == (C,)

    # One-time wrapper-side prep (tiny compared to the batch arrays):
    #   transpose weight to [in, out] and store it in bf16.
    w_t = jnp.asarray(w_beta).T.astype(dot_dtype)
    b2 = jnp.asarray(b_beta, dtype=jnp.float32).reshape(1, C)
    r_arr = jnp.asarray(r, dtype=jnp.float32).reshape(1, 1)

    cap = _vmem_capacity_bytes()
    tb_max = _pick_row_tile(C, budget_bytes=int(0.55 * cap))

    # Batch tiling (no padding anywhere):
    #   - B fits in one tile: use >=2 grid steps when cheaply possible so both
    #     v7x TensorCores get work, otherwise a single full-extent block.
    #   - B larger than a tile: TB is a multiple of 8; the last block may be
    #     partial (Pallas masks the ragged rows; rows are independent).
    if B <= tb_max:
        if B % 8 == 0 and B >= 16:
            TB = max(8, _round_up(B // 2, 8))
        else:
            TB = B  # full-extent batch block (legal for any B); grid == 1
    else:
        TB = tb_max
    grid = (pl.cdiv(B, TB),)

    def build(single_buffer_params):
        # Grid-invariant operands: request single buffering to halve their
        # VMEM residency (they are DMA'd once either way).
        pm = dict(pipeline_mode=pl.Buffered(1)) if single_buffer_params else {}
        return pl.pallas_call(
            affine_kernel,
            out_shape=jax.ShapeDtypeStruct((B, C), x.dtype),
            grid=grid,
            in_specs=[
                # runtime scalar r in SMEM (no recompile when r changes)
                pl.BlockSpec((1, 1), lambda i: (0, 0),
                             memory_space=pltpu.MemorySpace.SMEM),
                pl.BlockSpec((TB, C), lambda i: (i, 0)),      # x (batch-tiled)
                pl.BlockSpec((TB, C), lambda i: (i, 0)),      # y (batch-tiled)
                pl.BlockSpec((C, C), lambda i: (0, 0), **pm),  # W^T (resident)
                pl.BlockSpec((1, C), lambda i: (0, 0), **pm),  # b   (resident)
            ],
            out_specs=pl.BlockSpec((TB, C), lambda i: (i, 0)),
            compiler_params=pltpu.CompilerParams(
                dimension_semantics=("parallel",),
                vmem_limit_bytes=int(0.8 * cap),
            ),
        )

    try:
        out = build(True)(r_arr, x, y, w_t, b2)
        out = jax.block_until_ready(out)
    except Exception:
        # Fallback if this JAX build rejects buffer_count=1 for pallas_call
        # auto-pipelining: identical kernel, default (double) buffering.
        out = build(False)(r_arr, x, y, w_t, b2)

    return out


def affine_reference(x, y, w_beta, b_beta, r=1.0, eps=_EPS):
    bias = y @ w_beta.T + b_beta
    xb = x + r * bias
    norm = jnp.maximum(jnp.linalg.norm(xb, axis=1, keepdims=True), eps)
    return xb / norm


if __name__ == "__main__":
    B, C = 8, 32  # batch (seq) = 8, num_features = 32
    key = jax.random.PRNGKey(0)
    kx, ky, kw, kb = jax.random.split(key, 4)

    x = jax.random.normal(kx, (B, C), dtype=jnp.float32)
    y = jax.random.normal(ky, (B, C), dtype=jnp.float32)
    # fc_beta.linear1 params (PyTorch Linear layout: weight [out, in], bias [out])
    w_beta = jax.random.normal(kw, (C, C), dtype=jnp.float32) * 0.1
    b_beta = jax.random.normal(kb, (C,), dtype=jnp.float32) * 0.1
    r = 1.0

    out = affine_forward(x, y, w_beta, b_beta, r)
    out = jax.block_until_ready(out)

    ref = affine_reference(x, y, w_beta, b_beta, r)
    assert out.shape == (B, C)
    max_err = float(jnp.max(jnp.abs(out - ref)))
    # bf16 matmul operands (f32 accumulation) -> slightly looser tolerance.
    assert max_err < 5e-3, f"mismatch vs reference: max abs err {max_err}"

    print("KERNEL_OK")
</pallas_src>

<mosaic_0001>
module attributes {stable_mosaic.version = 11 : i64} {
  func.func @affine_kernel(%arg0: i32, %arg1: memref<1x1xf32, #tpu.memory_space<smem>>, %arg2: memref<8x32xf32, #tpu.memory_space<vmem>>, %arg3: memref<8x32xf32, #tpu.memory_space<vmem>>, %arg4: memref<32x32xbf16, #tpu.memory_space<vmem>>, %arg5: memref<1x32xf32, #tpu.memory_space<vmem>>, %arg6: memref<8x32xf32, #tpu.memory_space<vmem>>) attributes {dimension_semantics = [#tpu.dimension_semantics<parallel>], iteration_bounds = array<i64: 1>, scalar_prefetch = 0 : i64, scratch_operands = 0 : i64, tpu.core_type = #tpu.core_type<tc>, window_params = [{transform_indices = @transform_0, window_bounds = array<i64: 1, 1>}, {transform_indices = @transform_1, window_bounds = array<i64: 8, 32>}, {transform_indices = @transform_2, window_bounds = array<i64: 8, 32>}, {pipeline_mode = #tpu.pipeline_mode<synchronous>, transform_indices = @transform_3, window_bounds = array<i64: 32, 32>}, {pipeline_mode = #tpu.pipeline_mode<synchronous>, transform_indices = @transform_4, window_bounds = array<i64: 1, 32>}, {transform_indices = @transform_5, window_bounds = array<i64: 8, 32>}]} {
    %c0 = arith.constant 0 : index
    %c0_0 = arith.constant 0 : index
    %0 = memref.load %arg1[%c0, %c0_0] : memref<1x1xf32, #tpu.memory_space<smem>>
    %c0_1 = arith.constant 0 : index
    %c0_2 = arith.constant 0 : index
    %1 = vector.load %arg3[%c0_1, %c0_2] : memref<8x32xf32, #tpu.memory_space<vmem>>, vector<8x32xf32>
    %2 = arith.truncf %1 : vector<8x32xf32> to vector<8x32xbf16>
    %c0_3 = arith.constant 0 : index
    %c0_4 = arith.constant 0 : index
    %3 = vector.load %arg4[%c0_3, %c0_4] : memref<32x32xbf16, #tpu.memory_space<vmem>>, vector<32x32xbf16>
    %cst = arith.constant dense<0.000000e+00> : vector<8x32xf32>
    %4 = tpu.matmul %2, %3, %cst {dimension_numbers = #tpu.dot_dimension_numbers<[1], [0], [0], [1], [0, 0, 1, 1], [], []>} : vector<8x32xbf16>, vector<32x32xbf16>, vector<8x32xf32> -> vector<8x32xf32>
    %c0_5 = arith.constant 0 : index
    %c0_6 = arith.constant 0 : index
    %5 = vector.load %arg5[%c0_5, %c0_6] : memref<1x32xf32, #tpu.memory_space<vmem>>, vector<1x32xf32>
    %6 = vector.broadcast %5 : vector<1x32xf32> to vector<8x32xf32>
    %7 = arith.addf %4, %6 : vector<8x32xf32>
    %c0_7 = arith.constant 0 : index
    %c0_8 = arith.constant 0 : index
    %8 = vector.load %arg2[%c0_7, %c0_8] : memref<8x32xf32, #tpu.memory_space<vmem>>, vector<8x32xf32>
    %9 = vector.broadcast %0 : f32 to vector<8x32xf32>
    %10 = arith.mulf %9, %7 : vector<8x32xf32>
    %11 = arith.addf %8, %10 : vector<8x32xf32>
    %12 = arith.mulf %11, %11 : vector<8x32xf32>
    %cst_9 = arith.constant dense<0.000000e+00> : vector<8xf32>
    %13 = vector.multi_reduction <add>, %12, %cst_9 [1] : vector<8x32xf32> to vector<8xf32>
    %14 = vector.shape_cast %13 : vector<8xf32> to vector<8x1xf32>
    %cst_10 = arith.constant 1.000000e-24 : f32
    %15 = vector.broadcast %cst_10 : f32 to vector<8x1xf32>
    %16 = arith.maximumf %14, %15 : vector<8x1xf32>
    %17 = math.rsqrt %16 : vector<8x1xf32>
    %18 = vector.broadcast %17 : vector<8x1xf32> to vector<8x32xf32>
    %19 = arith.mulf %11, %18 : vector<8x32xf32>
    %c0_11 = arith.constant 0 : index
    %c0_12 = arith.constant 0 : index
    %20 = vector.load %arg6[%c0_11, %c0_12] : memref<8x32xf32, #tpu.memory_space<vmem>>, vector<8x32xf32>
    tpu.vector_store %arg6[%c0_11, %c0_12], %19 {strides = array<i32>} : memref<8x32xf32, #tpu.memory_space<vmem>>, vector<8x32xf32>,
    return
  }
  func.func @transform_0(%arg0: i32) -> (i32, i32) {
    %c0_i32 = arith.constant 0 : i32
    %c0_i32_0 = arith.constant 0 : i32
    %c0_i32_1 = arith.constant 0 : i32
    return %c0_i32, %c0_i32_0 : i32, i32
  }
  func.func @transform_1(%arg0: i32) -> (i32, i32) {
    %c0_i32 = arith.constant 0 : i32
    %c0_i32_0 = arith.constant 0 : i32
    return %arg0, %c0_i32 : i32, i32
  }
  func.func @transform_2(%arg0: i32) -> (i32, i32) {
    %c0_i32 = arith.constant 0 : i32
    %c0_i32_0 = arith.constant 0 : i32
    return %arg0, %c0_i32 : i32, i32
  }
  func.func @transform_3(%arg0: i32) -> (i32, i32) {
    %c0_i32 = arith.constant 0 : i32
    %c0_i32_0 = arith.constant 0 : i32
    %c0_i32_1 = arith.constant 0 : i32
    return %c0_i32, %c0_i32_0 : i32, i32
  }
  func.func @transform_4(%arg0: i32) -> (i32, i32) {
    %c0_i32 = arith.constant 0 : i32
    %c0_i32_0 = arith.constant 0 : i32
    %c0_i32_1 = arith.constant 0 : i32
    return %c0_i32, %c0_i32_0 : i32, i32
  }
  func.func @transform_5(%arg0: i32) -> (i32, i32) {
    %c0_i32 = arith.constant 0 : i32
    %c0_i32_0 = arith.constant 0 : i32
    return %arg0, %c0_i32 : i32, i32
  }
}

module attributes {stable_mosaic.version = 11 : i64} {
  func.func @affine_kernel(%arg0: i32, %arg1: memref<1x1xf32, #tpu.memory_space<smem>>, %arg2: memref<8x32xf32, #tpu.memory_space<vmem>>, %arg3: memref<8x32xf32, #tpu.memory_space<vmem>>, %arg4: memref<32x32xbf16, #tpu.memory_space<vmem>>, %arg5: memref<1x32xf32, #tpu.memory_space<vmem>>, %arg6: memref<8x32xf32, #tpu.memory_space<vmem>>) attributes {dimension_semantics = [#tpu.dimension_semantics<parallel>], iteration_bounds = array<i64: 1>, scalar_prefetch = 0 : i64, scratch_operands = 0 : i64, tpu.core_type = #tpu.core_type<tc>, window_params = [{transform_indices = @transform_0, window_bounds = array<i64: 1, 1>}, {transform_indices = @transform_1, window_bounds = array<i64: 8, 32>}, {transform_indices = @transform_2, window_bounds = array<i64: 8, 32>}, {pipeline_mode = #tpu.pipeline_mode<synchronous>, transform_indices = @transform_3, window_bounds = array<i64: 32, 32>}, {pipeline_mode = #tpu.pipeline_mode<synchronous>, transform_indices = @transform_4, window_bounds = array<i64: 1, 32>}, {transform_indices = @transform_5, window_bounds = array<i64: 8, 32>}]} {
    %c0 = arith.constant 0 : index
    %c0_0 = arith.constant 0 : index
    %0 = memref.load %arg1[%c0, %c0_0] : memref<1x1xf32, #tpu.memory_space<smem>>
    %c0_1 = arith.constant 0 : index
    %c0_2 = arith.constant 0 : index
    %1 = vector.load %arg3[%c0_1, %c0_2] : memref<8x32xf32, #tpu.memory_space<vmem>>, vector<8x32xf32>
    %2 = arith.truncf %1 : vector<8x32xf32> to vector<8x32xbf16>
    %c0_3 = arith.constant 0 : index
    %c0_4 = arith.constant 0 : index
    %3 = vector.load %arg4[%c0_3, %c0_4] : memref<32x32xbf16, #tpu.memory_space<vmem>>, vector<32x32xbf16>
    %cst = arith.constant dense<0.000000e+00> : vector<8x32xf32>
    %4 = tpu.matmul %2, %3, %cst {dimension_numbers = #tpu.dot_dimension_numbers<[1], [0], [0], [1], [0, 0, 1, 1], [], []>} : vector<8x32xbf16>, vector<32x32xbf16>, vector<8x32xf32> -> vector<8x32xf32>
    %c0_5 = arith.constant 0 : index
    %c0_6 = arith.constant 0 : index
    %5 = vector.load %arg5[%c0_5, %c0_6] : memref<1x32xf32, #tpu.memory_space<vmem>>, vector<1x32xf32>
    %6 = vector.broadcast %5 : vector<1x32xf32> to vector<8x32xf32>
    %7 = arith.addf %4, %6 : vector<8x32xf32>
    %c0_7 = arith.constant 0 : index
    %c0_8 = arith.constant 0 : index
    %8 = vector.load %arg2[%c0_7, %c0_8] : memref<8x32xf32, #tpu.memory_space<vmem>>, vector<8x32xf32>
    %9 = vector.broadcast %0 : f32 to vector<8x32xf32>
    %10 = arith.mulf %9, %7 : vector<8x32xf32>
    %11 = arith.addf %8, %10 : vector<8x32xf32>
    %12 = arith.mulf %11, %11 : vector<8x32xf32>
    %cst_9 = arith.constant dense<0.000000e+00> : vector<8xf32>
    %13 = vector.multi_reduction <add>, %12, %cst_9 [1] : vector<8x32xf32> to vector<8xf32>
    %14 = vector.shape_cast %13 : vector<8xf32> to vector<8x1xf32>
    %cst_10 = arith.constant 1.000000e-24 : f32
    %15 = vector.broadcast %cst_10 : f32 to vector<8x1xf32>
    %16 = arith.maximumf %14, %15 : vector<8x1xf32>
    %17 = math.rsqrt %16 : vector<8x1xf32>
    %18 = vector.broadcast %17 : vector<8x1xf32> to vector<8x32xf32>
    %19 = arith.mulf %11, %18 : vector<8x32xf32>
    %c0_11 = arith.constant 0 : index
    %c0_12 = arith.constant 0 : index
    %20 = vector.load %arg6[%c0_11, %c0_12] : memref<8x32xf32, #tpu.memory_space<vmem>>, vector<8x32xf32>
    tpu.vector_store %arg6[%c0_11, %c0_12], %19 {strides = array<i32>} : memref<8x32xf32, #tpu.memory_space<vmem>>, vector<8x32xf32>,
    return
  }
  func.func @transform_0(%arg0: i32) -> (i32, i32) {
    %c0_i32 = arith.constant 0 : i32
    %c0_i32_0 = arith.constant 0 : i32
    %c0_i32_1 = arith.constant 0 : i32
    return %c0_i32, %c0_i32_0 : i32, i32
  }
  func.func @transform_1(%arg0: i32) -> (i32, i32) {
    %c0_i32 = arith.constant 0 : i32
    %c0_i32_0 = arith.constant 0 : i32
    return %arg0, %c0_i32 : i32, i32
  }
  func.func @transform_2(%arg0: i32) -> (i32, i32) {
    %c0_i32 = arith.constant 0 : i32
    %c0_i32_0 = arith.constant 0 : i32
    return %arg0, %c0_i32 : i32, i32
  }
  func.func @transform_3(%arg0: i32) -> (i32, i32) {
    %c0_i32 = arith.constant 0 : i32
    %c0_i32_0 = arith.constant 0 : i32
    %c0_i32_1 = arith.constant 0 : i32
    return %c0_i32, %c0_i32_0 : i32, i32
  }
  func.func @transform_4(%arg0: i32) -> (i32, i32) {
    %c0_i32 = arith.constant 0 : i32
    %c0_i32_0 = arith.constant 0 : i32
    %c0_i32_1 = arith.constant 0 : i32
    return %c0_i32, %c0_i32_0 : i32, i32
  }
  func.func @transform_5(%arg0: i32) -> (i32, i32) {
    %c0_i32 = arith.constant 0 : i32
    %c0_i32_0 = arith.constant 0 : i32
    return %arg0, %c0_i32 : i32, i32
  }
}

</mosaic_0001>

<bundles_post_ra>
// kernel: tpu_custom_call.1
= control target key start
LH: loop header
LB: loop body
LE: loop exit
PB: predicated region body
PF: predicated region fallthrough
CT: control target
= control target key end

     0   :  { %11 = vsyncpa [#allocation4], 0  ;;  %s324_s0 = inlined_call_operand.<no memory space> [shape: f32[1,1], index: 0, kind: input, shape index: {}]   ;;  %s325_s1 = inlined_call_operand.hbm [shape: f32[8,32], index: 1, kind: input, shape index: {}]   ;;  %s326_s2 = inlined_call_operand.hbm [shape: f32[8,32], index: 2, kind: input, shape index: {}]   ;;  %s327_s3 = inlined_call_operand.hbm [shape: bf16[32,32], index: 3, kind: input, shape index: {}]   ;;  %s328_s4 = inlined_call_operand.vmem [shape: f32[1,32], index: 4, kind: input, shape index: {}]   ;;  %s329_s5 = inlined_call_operand.hbm [shape: f32[8,32], index: 5, kind: output, shape index: {}]  }
   0x1   :  { %12 = vsyncpa [#allocation7], 0  ;;  %s32_s20 = sshll.u32 %s326_s2, 4  ;;  %s33_s20 = int_to_ptr.hbm [resolvable:$true] %s32_s20 }
   0x2   :  { %13 = vsyncpa [#allocation5], 0  ;;  %s267_s21 = smov [#allocation6]   ;;  %s21_s25 = sshll.u32 %s325_s1, 4  ;;  %s22_s25 = int_to_ptr.hbm [resolvable:$true] %s21_s25 }
   0x3   :  { %s34_s22 = sshll.u32 %s267_s21, 4  ;;  %s268_s26 = smov [#allocation3]   ;;  %s35_s22 = int_to_ptr.vmem [resolvable:$true] %s34_s22 }
   0x4   :  { %37 = dma.hbm_to_vmem [thread:$0]  %s33_s20, 128, %s35_s22, [#allocation7]  }
   0x5   :  { %s23_s27 = sshll.u32 %s268_s26, 4  ;;  %s42_s30 = sshll.u32 %s327_s3, 4  ;;  %s24_s27 = int_to_ptr.vmem [resolvable:$true] %s23_s27  ;;  %s43_s30 = int_to_ptr.hbm [resolvable:$true] %s42_s30 }
   0x6   :  { %26 = dma.hbm_to_vmem [thread:$0]  %s22_s25, 128, %s24_s27, [#allocation4]  }
   0x7   :  { %s269_s2 = smov [#allocation8]   ;;  %s270_s7 = smov 64  }
   0x8   :  { %s44_s6 = sshll.u32 %s269_s2, 4  ;;  %s271_s8 = smov 4   ;;  %s45_s6 = int_to_ptr.vmem [resolvable:$true] %s44_s6 }
   0x9   :  { %50 = dma.hbm_to_vmem [thread:$0]  %s43_s30, 256, %s45_s6, [#allocation7], %s270_s7, %s270_s7, %s271_s8  }
   0xa   :  { %261 = dma.done.wait [#allocation4], 128  }
   0xb   :  { %262 = vsyncadd [#allocation4], 4294967168 }
   0xc   :  { %263 = dma.done.wait [#allocation7], 384  }
   0xd   :  { %264 = vsyncadd [#allocation7], 4294966912  ;;  %v155_v0 = vld [vmem:[#allocation8 + $0x8] sm:$0xff]  ;;  %v154_v1 = vld [vmem:[#allocation8] sm:$0xff]  ;;  %vm89_vm0 = vcmask 261120   ;;  %v107_v6 = vstv %s324_s0  ;;  %s272_s0 = smov [#allocation9]  }
   0xe   :  { %99 = vmatpush.bf16.msra.mxu0 %v155_v0  ;;  %v67_v2 = vld [vmem:[#allocation6] sm:$0xff]  ;;  %v162_v4 = vld [vmem:[%s328_s4] ss:$0 sm:$0xff]  ;;  %s132_s4 = sshll.u32 %s272_s0, 4  ;;  %s134_s13 = sshll.u32 %s329_s5, 4  ;;  %s133_s4 = int_to_ptr.vmem [resolvable:$true] %s132_s4  ;;  %s135_s13 = int_to_ptr.hbm [resolvable:$true] %s134_s13 }
   0xf   :  { %v68_v3 = vpack.c.bf16 %v67_v2, %v67_v2  ;;  %v106_v8 = vld [vmem:[#allocation3] sm:$0xff] }
  0x12   :  { %100 = vmatpush.bf16.msra.mxu0 %v154_v1 }
  0x15   :  { %153 = vmatmul.msk.bf16.vlgmr.msra.gmra.mxu0 %vm89_vm0, %v68_v3 }
  0x92   :  { %v102_v5 = vpop.f32.mrf.mxu0 }
  0x93   :  { %v103_v7 = vadd.f32 %v162_v4, %v102_v5 }
  0x95   :  { %v108_v9 = vmul.f32 %v107_v6, %v103_v7 }
  0x97   :  { %v109_v10 = vadd.f32 %v108_v9, %v106_v8 }
  0x99   :  { %v110_v11 = vmul.f32 %v109_v10, %v109_v10 }
  0x9a   :  { %v104_v12 = vpop.f32.mrf.mxu0 }
  0x9b   :  { %v111_v13 = vsel %vm89_vm0, %v110_v11, 0.0 }
  0x9c   :  { %112 = vadd.xlane.f32.xlu0 %v111_v13 }
 0x10f   :  { %v113_v14 = vpop.xlane.xlu0 %112 }
 0x110   :  { %v114_v15 = vmax.f32 %v113_v14, 1e-24 }
 0x112   :  { %163 = vrsqrt.f32 %v114_v15  ;;  %vm121_vm2 = vweird.f32 %v114_v15 }
 0x118   :  { %v164_v16 = vpop.eup %163 }
 0x119   :  { %v116_v17 = vmul.f32 %v164_v16, %v114_v15  ;;  %vm122_vm1 = vweird.f32 %v164_v16 }
 0x11a   :  { %vm123_vm3 = vmor %vm121_vm2, %vm122_vm1 }
 0x11b   :  { %v117_v18 = vmul.f32 %v164_v16, %v116_v17 }
 0x11d   :  { %v118_v19 = vmul.f32 0.5, %v117_v18 }
 0x11f   :  { %v119_v20 = vsub.f32 1.5, %v118_v19 }
 0x121   :  { %v120_v21 = vmul.f32 %v164_v16, %v119_v20 }
 0x123   :  { %v124_v22 = vsel %vm123_vm3, %v164_v16, %v120_v21 }
 0x124   :  { %v125_v23 = vmul.f32 %v124_v22, %v109_v10 }
 0x126   :  { %126 = vst.msk [vmem:[#allocation9] sm:$0xff] %vm89_vm0, %v125_v23 }
 0x127   :  { %137 = dma.vmem_to_hbm [thread:$0]  %s133_s4, 128, %s135_s13, [#allocation5]  }
 0x128   :  { %265 = dma.done.wait [#allocation5], 128  }
 0x129   :  { %266 = vsyncadd [#allocation5], 4294967168 }
 0x12a   :  { %142 = vsyncpa [#allocation4], 1 }
 0x12b   :  { %143 = vsyncpa [#allocation7], 1 }
 0x12c   :  { %144 = vsyncpa [#allocation5], 1 }

// kernel: tpu_custom_call.1
= control target key start
LH: loop header
LB: loop body
LE: loop exit
PB: predicated region body
PF: predicated region fallthrough
CT: control target
= control target key end

     0   :  { %11 = vsyncpa [#allocation4], 0  ;;  %s324_s0 = inlined_call_operand.<no memory space> [shape: f32[1,1], index: 0, kind: input, shape index: {}]   ;;  %s325_s1 = inlined_call_operand.hbm [shape: f32[8,32], index: 1, kind: input, shape index: {}]   ;;  %s326_s2 = inlined_call_operand.hbm [shape: f32[8,32], index: 2, kind: input, shape index: {}]   ;;  %s327_s3 = inlined_call_operand.hbm [shape: bf16[32,32], index: 3, kind: input, shape index: {}]   ;;  %s328_s4 = inlined_call_operand.vmem [shape: f32[1,32], index: 4, kind: input, shape index: {}]   ;;  %s329_s5 = inlined_call_operand.hbm [shape: f32[8,32], index: 5, kind: output, shape index: {}]  }
   0x1   :  { %12 = vsyncpa [#allocation7], 0  ;;  %s32_s20 = sshll.u32 %s326_s2, 4  ;;  %s33_s20 = int_to_ptr.hbm [resolvable:$true] %s32_s20 }
   0x2   :  { %13 = vsyncpa [#allocation5], 0  ;;  %s267_s21 = smov [#allocation6]   ;;  %s21_s25 = sshll.u32 %s325_s1, 4  ;;  %s22_s25 = int_to_ptr.hbm [resolvable:$true] %s21_s25 }
   0x3   :  { %s34_s22 = sshll.u32 %s267_s21, 4  ;;  %s268_s26 = smov [#allocation3]   ;;  %s35_s22 = int_to_ptr.vmem [resolvable:$true] %s34_s22 }
   0x4   :  { %37 = dma.hbm_to_vmem [thread:$0]  %s33_s20, 128, %s35_s22, [#allocation7]  }
   0x5   :  { %s23_s27 = sshll.u32 %s268_s26, 4  ;;  %s42_s30 = sshll.u32 %s327_s3, 4  ;;  %s24_s27 = int_to_ptr.vmem [resolvable:$true] %s23_s27  ;;  %s43_s30 = int_to_ptr.hbm [resolvable:$true] %s42_s30 }
   0x6   :  { %26 = dma.hbm_to_vmem [thread:$0]  %s22_s25, 128, %s24_s27, [#allocation4]  }
   0x7   :  { %s269_s2 = smov [#allocation8]   ;;  %s270_s7 = smov 64  }
   0x8   :  { %s44_s6 = sshll.u32 %s269_s2, 4  ;;  %s271_s8 = smov 4   ;;  %s45_s6 = int_to_ptr.vmem [resolvable:$true] %s44_s6 }
   0x9   :  { %50 = dma.hbm_to_vmem [thread:$0]  %s43_s30, 256, %s45_s6, [#allocation7], %s270_s7, %s270_s7, %s271_s8  }
   0xa   :  { %261 = dma.done.wait [#allocation4], 128  }
   0xb   :  { %262 = vsyncadd [#allocation4], 4294967168 }
   0xc   :  { %263 = dma.done.wait [#allocation7], 384  }
   0xd   :  { %264 = vsyncadd [#allocation7], 4294966912  ;;  %v155_v0 = vld [vmem:[#allocation8 + $0x8] sm:$0xff]  ;;  %v154_v1 = vld [vmem:[#allocation8] sm:$0xff]  ;;  %vm89_vm0 = vcmask 261120   ;;  %v107_v6 = vstv %s324_s0  ;;  %s272_s0 = smov [#allocation9]  }
   0xe   :  { %99 = vmatpush.bf16.msra.mxu0 %v155_v0  ;;  %v67_v2 = vld [vmem:[#allocation6] sm:$0xff]  ;;  %v162_v4 = vld [vmem:[%s328_s4] ss:$0 sm:$0xff]  ;;  %s132_s4 = sshll.u32 %s272_s0, 4  ;;  %s134_s13 = sshll.u32 %s329_s5, 4  ;;  %s133_s4 = int_to_ptr.vmem [resolvable:$true] %s132_s4  ;;  %s135_s13 = int_to_ptr.hbm [resolvable:$true] %s134_s13 }
   0xf   :  { %v68_v3 = vpack.c.bf16 %v67_v2, %v67_v2  ;;  %v106_v8 = vld [vmem:[#allocation3] sm:$0xff] }
  0x12   :  { %100 = vmatpush.bf16.msra.mxu0 %v154_v1 }
  0x15   :  { %153 = vmatmul.msk.bf16.vlgmr.msra.gmra.mxu0 %vm89_vm0, %v68_v3 }
  0x92   :  { %v102_v5 = vpop.f32.mrf.mxu0 }
  0x93   :  { %v103_v7 = vadd.f32 %v162_v4, %v102_v5 }
  0x95   :  { %v108_v9 = vmul.f32 %v107_v6, %v103_v7 }
  0x97   :  { %v109_v10 = vadd.f32 %v108_v9, %v106_v8 }
  0x99   :  { %v110_v11 = vmul.f32 %v109_v10, %v109_v10 }
  0x9a   :  { %v104_v12 = vpop.f32.mrf.mxu0 }
  0x9b   :  { %v111_v13 = vsel %vm89_vm0, %v110_v11, 0.0 }
  0x9c   :  { %112 = vadd.xlane.f32.xlu0 %v111_v13 }
 0x10f   :  { %v113_v14 = vpop.xlane.xlu0 %112 }
 0x110   :  { %v114_v15 = vmax.f32 %v113_v14, 1e-24 }
 0x112   :  { %163 = vrsqrt.f32 %v114_v15  ;;  %vm121_vm2 = vweird.f32 %v114_v15 }
 0x118   :  { %v164_v16 = vpop.eup %163 }
 0x119   :  { %v116_v17 = vmul.f32 %v164_v16, %v114_v15  ;;  %vm122_vm1 = vweird.f32 %v164_v16 }
 0x11a   :  { %vm123_vm3 = vmor %vm121_vm2, %vm122_vm1 }
 0x11b   :  { %v117_v18 = vmul.f32 %v164_v16, %v116_v17 }
 0x11d   :  { %v118_v19 = vmul.f32 0.5, %v117_v18 }
 0x11f   :  { %v119_v20 = vsub.f32 1.5, %v118_v19 }
 0x121   :  { %v120_v21 = vmul.f32 %v164_v16, %v119_v20 }
 0x123   :  { %v124_v22 = vsel %vm123_vm3, %v164_v16, %v120_v21 }
 0x124   :  { %v125_v23 = vmul.f32 %v124_v22, %v109_v10 }
 0x126   :  { %126 = vst.msk [vmem:[#allocation9] sm:$0xff] %vm89_vm0, %v125_v23 }
 0x127   :  { %137 = dma.vmem_to_hbm [thread:$0]  %s133_s4, 128, %s135_s13, [#allocation5]  }
 0x128   :  { %265 = dma.done.wait [#allocation5], 128  }
 0x129   :  { %266 = vsyncadd [#allocation5], 4294967168 }
 0x12a   :  { %142 = vsyncpa [#allocation4], 1 }
 0x12b   :  { %143 = vsyncpa [#allocation7], 1 }
 0x12c   :  { %144 = vsyncpa [#allocation5], 1 }

</bundles_post_ra>
